<compile_context>
chip_gen: v7x
topology: tpu7x:2x2x1
jax: 0.10.0
libtpu: 0.0.40
codegen_flags: <defaults>
</compile_context>

<pallas_src>
import functools

import jax
import jax.numpy as jnp
import numpy as np
from jax import lax
from jax.experimental import pallas as pl
from jax.experimental.pallas import tpu as pltpu

_THRESHOLD = 1e-5
_DEFAULT_BLOCK_BYTES = 4 * 1024 * 1024  # per-input block target (HBM-bound kernel)


def _round_up(x, m):
    return ((x + m - 1) // m) * m


def _loss_values(x, y, *, alpha, lambd, is_kl, is_ce, axis):
    """Per-element loss contributions; softmax/log_softmax over `axis` (f32 in/out)."""
    # softmax / log_softmax of the model output (needed by every branch).
    mx = jnp.max(x, axis=axis, keepdims=True)
    sx = x - mx
    ex = jnp.exp(sx)
    zx = jnp.sum(ex, axis=axis, keepdims=True)
    log_p = sx - jnp.log(zx)
    p = ex * pl.reciprocal(zx)          # exact reciprocal (keeps 1e-4 tolerance)

    my = jnp.max(y, axis=axis, keepdims=True)
    sy = y - my
    ey = jnp.exp(sy)
    zy = jnp.sum(ey, axis=axis, keepdims=True)

    if is_kl:
        # p * (log_p * (1 + lambd) - log_q)           (q itself is not needed)
        log_q = sy - jnp.log(zy)
        return p * (log_p * (1.0 + lambd) - log_q)
    elif is_ce:
        # -(log_p * (q - p * lambd))                  (log_q is not needed)
        q = ey * pl.reciprocal(zy)
        return -(log_p * (q - p * lambd))
    else:
        a = float(alpha)
        ac = 1.0 - a
        log_q = sy - jnp.log(zy)
        q = ey * pl.reciprocal(zy)
        geo = jnp.exp(a * log_p + ac * log_q)         # == p**a * q**(1-a)
        val = a * p + ac * q - geo
        val = val / a / ac
        return val + log_p * p * lambd


def _store_partial(o_ref, partial):
    # Lane-dense (1, 8, 128) broadcast store of the block's partial sum
    # (unmasked vst; wrapper reads [:, 0, 0]).
    o_ref[...] = jnp.zeros_like(o_ref) + partial


def _kernel_rows(out_ref, lab_ref, o_ref, *, rows, tb, alpha, lambd,
                 is_kl, is_ce, mask_rows):
    """2-D case: block (tb, C); softmax over the last (lane) axis."""
    x = out_ref[...].astype(jnp.float32)
    y = lab_ref[...].astype(jnp.float32)
    valid = None
    if mask_rows:
        r = lax.broadcasted_iota(jnp.int32, x.shape, 0) + pl.program_id(0) * tb
        valid = r < rows
        x = jnp.where(valid, x, 0.0)
        y = jnp.where(valid, y, 0.0)
    val = _loss_values(x, y, alpha=alpha, lambd=lambd,
                       is_kl=is_kl, is_ce=is_ce, axis=-1)
    if valid is not None:
        val = jnp.where(valid, val, 0.0)
    _store_partial(o_ref, jnp.sum(val))


def _kernel_nchw(out_ref, lab_ref, o_ref, *, spatial, ts, alpha, lambd,
                 is_kl, is_ce, mask_s):
    """(N, C, S) case: block (C, ts) (N squeezed); softmax over sublane axis 0."""
    x = out_ref[...].astype(jnp.float32)
    y = lab_ref[...].astype(jnp.float32)
    valid = None
    if mask_s:
        c = lax.broadcasted_iota(jnp.int32, x.shape, 1) + pl.program_id(1) * ts
        valid = c < spatial
        x = jnp.where(valid, x, 0.0)
        y = jnp.where(valid, y, 0.0)
    val = _loss_values(x, y, alpha=alpha, lambd=lambd,
                       is_kl=is_kl, is_ce=is_ce, axis=0)
    if valid is not None:
        val = jnp.where(valid, val, 0.0)
    _store_partial(o_ref, jnp.sum(val))


def alpha_divergence_top1_entropy_loss(out, labels, *, alpha=0.0, lambd=0.0,
                                       target_block_bytes=_DEFAULT_BLOCK_BYTES):
    """JAX/Pallas equivalent of the PyTorch module's forward().

    `out` and `labels` are logits (f32 or bf16); softmax is over dim=1.
    Returns a scalar float32.
    """
    assert out.shape == labels.shape, "out/labels shapes must match"
    assert out.ndim >= 2, "expects at least (batch, classes)"

    is_kl = abs(alpha - 1.0) < _THRESHOLD
    is_ce = abs(alpha) < _THRESHOLD
    dsize = max(jnp.dtype(out.dtype).itemsize, jnp.dtype(labels.dtype).itemsize)

    if out.ndim == 2:
        R, C = out.shape
        # Byte-targeted tile: ~target_block_bytes per input block, rows multiple of 8.
        tb = (target_block_bytes // (C * dsize)) // 8 * 8
        tb = max(8, min(tb, _round_up(R, 8)))
        nblk = pl.cdiv(R, tb)
        grid = (nblk,)
        block_bytes = tb * C * dsize
        kernel = functools.partial(
            _kernel_rows, rows=R, tb=tb, alpha=float(alpha), lambd=float(lambd),
            is_kl=is_kl, is_ce=is_ce, mask_rows=(R % tb != 0))
        in_specs = [pl.BlockSpec((tb, C), lambda i: (i, 0)),
                    pl.BlockSpec((tb, C), lambda i: (i, 0))]
        out_specs = pl.BlockSpec((1, 8, 128), lambda i: (i, 0, 0))
        out_shape = jax.ShapeDtypeStruct((nblk, 8, 128), jnp.float32)
        dim_sem = ("parallel",)
        args = (out, labels)
    else:
        # (N, C, *spatial): flatten spatial dims (free contiguous reshape — no
        # extra HBM transpose pass); softmax over the class/sublane axis in-kernel.
        N, C = out.shape[0], out.shape[1]
        S = int(np.prod(out.shape[2:]))
        x3 = out.reshape(N, C, S)
        y3 = labels.reshape(N, C, S)
        if C * S * dsize <= target_block_bytes or S < 128:
            ts = S
        else:
            ts = (target_block_bytes // (C * dsize)) // 128 * 128
            ts = max(128, min(ts, (S // 128) * 128))
        gs = pl.cdiv(S, ts)
        grid = (N, gs)
        block_bytes = C * ts * dsize
        kernel = functools.partial(
            _kernel_nchw, spatial=S, ts=ts, alpha=float(alpha), lambd=float(lambd),
            is_kl=is_kl, is_ce=is_ce, mask_s=(S % ts != 0))
        # Note: if N is huge and C*spatial tiny, blocks are small (perf only).
        in_specs = [pl.BlockSpec((None, C, ts), lambda n, s: (n, 0, s)),
                    pl.BlockSpec((None, C, ts), lambda n, s: (n, 0, s))]
        out_specs = pl.BlockSpec((1, 8, 128), lambda n, s: (n * gs + s, 0, 0))
        out_shape = jax.ShapeDtypeStruct((N * gs, 8, 128), jnp.float32)
        dim_sem = ("parallel", "parallel")
        args = (x3, y3)

    # 2 inputs x 2 pipeline buffers per block + headroom; capped to fit v7x (64 MiB VMEM).
    vmem_limit = int(min(48 * 1024 * 1024,
                         max(32 * 1024 * 1024, 4 * block_bytes + (4 << 20))))

    partials = pl.pallas_call(
        kernel,
        out_shape=out_shape,
        grid_spec=pltpu.PrefetchScalarGridSpec(
            num_scalar_prefetch=0,
            grid=grid,
            in_specs=in_specs,
            out_specs=out_specs,
        ),
        compiler_params=pltpu.CompilerParams(
            dimension_semantics=dim_sem,
            vmem_limit_bytes=vmem_limit,
        ),
    )(*args)
    # Each grid step wrote its partial sum broadcast over an (8,128) tile.
    return jnp.sum(partials[:, 0, 0])


# ----------------------- pure-JAX reference (torch semantics) -----------------------
def _reference(out, labels, alpha, lambd):
    out = out.astype(jnp.float32)
    labels = labels.astype(jnp.float32)
    p = jax.nn.softmax(out, axis=1)
    log_p = jax.nn.log_softmax(out, axis=1)
    if abs(alpha - 1.0) < _THRESHOLD:
        return jnp.sum(p * (log_p * (1.0 + lambd) - jax.nn.log_softmax(labels, axis=1)))
    elif abs(alpha) < _THRESHOLD:
        return jnp.sum(-(log_p * (jax.nn.softmax(labels, axis=1) - p * lambd)))
    else:
        q = jax.nn.softmax(labels, axis=1)
        a, ac = alpha, 1.0 - alpha
        val = a * p + ac * q - jnp.power(p, a) * jnp.power(q, ac)
        val = val / a / ac
        return jnp.sum(val + log_p * p * lambd)


if __name__ == "__main__":
    key = jax.random.PRNGKey(0)
    k1, k2 = jax.random.split(key)
    failures = []

    def check(name, got, ref, rtol=1e-4, atol=1e-3):
        got = np.asarray(jax.block_until_ready(got))
        ref = np.asarray(ref)
        if not np.allclose(got, ref, rtol=rtol, atol=atol):
            failures.append(f"{name}: got={got} ref={ref}")

    # 2-D logits (batch=16, classes=32); exercise all three alpha branches.
    x2 = jax.random.normal(k1, (16, 32), dtype=jnp.float32)
    y2 = jax.random.normal(k2, (16, 32), dtype=jnp.float32)
    for a, l in ((0.0, 0.0), (0.0, 0.1), (1.0, 0.1), (0.5, 0.1)):
        got = alpha_divergence_top1_entropy_loss(x2, y2, alpha=a, lambd=l)
        check(f"2d alpha={a} lambd={l}", got, _reference(x2, y2, a, l))

    # Ragged row count (exercises the row tail mask).
    x2r = jax.random.normal(k1, (19, 32), dtype=jnp.float32)
    y2r = jax.random.normal(k2, (19, 32), dtype=jnp.float32)
    got = alpha_divergence_top1_entropy_loss(x2r, y2r, alpha=0.5, lambd=0.05)
    check("2d ragged", got, _reference(x2r, y2r, 0.5, 0.05))

    # bf16 logits accepted directly (kernel computes in f32).
    got = alpha_divergence_top1_entropy_loss(
        x2.astype(jnp.bfloat16), y2.astype(jnp.bfloat16), alpha=1.0, lambd=0.1)
    check("2d bf16", got,
          _reference(x2.astype(jnp.bfloat16), y2.astype(jnp.bfloat16), 1.0, 0.1))

    # NCHW input (N=2, C=4, H=16, W=16), softmax over dim=1 — no wrapper transpose.
    x4 = jax.random.normal(k1, (2, 4, 16, 16), dtype=jnp.float32)
    y4 = jax.random.normal(k2, (2, 4, 16, 16), dtype=jnp.float32)
    for a in (0.0, 1.0, 0.5):
        got = alpha_divergence_top1_entropy_loss(x4, y4, alpha=a, lambd=0.05)
        check(f"4d alpha={a}", got, _reference(x4, y4, a, 0.05))

    # 3-D input with a tiny forced block target: exercises spatial tiling + lane mask.
    x3 = jax.random.normal(k1, (2, 4, 200), dtype=jnp.float32)
    y3 = jax.random.normal(k2, (2, 4, 200), dtype=jnp.float32)
    got = alpha_divergence_top1_entropy_loss(x3, y3, alpha=0.5, lambd=0.1,
                                             target_block_bytes=512)
    check("3d tiled+mask", got, _reference(x3, y3, 0.5, 0.1))

    if failures:
        for f in failures:
            print("MISMATCH", f)
    else:
        print("KERNEL_OK")
</pallas_src>

<mosaic_0001>
module attributes {stable_mosaic.version = 11 : i64} {
  func.func @_kernel_rows(%arg0: i32, %arg1: memref<16x32xf32, #tpu.memory_space<vmem>>, %arg2: memref<16x32xf32, #tpu.memory_space<vmem>>, %arg3: memref<1x8x128xf32, #tpu.memory_space<vmem>>) attributes {dimension_semantics = [#tpu.dimension_semantics<parallel>], iteration_bounds = array<i64: 1>, scalar_prefetch = 0 : i64, scratch_operands = 0 : i64, tpu.core_type = #tpu.core_type<tc>, window_params = [{transform_indices = @transform_0, window_bounds = array<i64: 16, 32>}, {transform_indices = @transform_1, window_bounds = array<i64: 16, 32>}, {transform_indices = @transform_2, window_bounds = array<i64: 1, 8, 128>}]} {
    %c0 = arith.constant 0 : index
    %c0_0 = arith.constant 0 : index
    %0 = vector.load %arg1[%c0, %c0_0] : memref<16x32xf32, #tpu.memory_space<vmem>>, vector<16x32xf32>
    %c0_1 = arith.constant 0 : index
    %c0_2 = arith.constant 0 : index
    %1 = vector.load %arg2[%c0_1, %c0_2] : memref<16x32xf32, #tpu.memory_space<vmem>>, vector<16x32xf32>
    %cst = arith.constant dense<0xFF800000> : vector<16xf32>
    %2 = vector.multi_reduction <maximumf>, %0, %cst [1] : vector<16x32xf32> to vector<16xf32>
    %3 = vector.shape_cast %2 : vector<16xf32> to vector<16x1xf32>
    %4 = vector.broadcast %3 : vector<16x1xf32> to vector<16x32xf32>
    %5 = arith.subf %0, %4 : vector<16x32xf32>
    %6 = math.exp %5 : vector<16x32xf32>
    %cst_3 = arith.constant dense<0.000000e+00> : vector<16xf32>
    %7 = vector.multi_reduction <add>, %6, %cst_3 [1] : vector<16x32xf32> to vector<16xf32>
    %8 = vector.shape_cast %7 : vector<16xf32> to vector<16x1xf32>
    %9 = math.log %8 : vector<16x1xf32>
    %10 = vector.broadcast %9 : vector<16x1xf32> to vector<16x32xf32>
    %11 = arith.subf %5, %10 : vector<16x32xf32>
    %12 = tpu.reciprocal %8 : vector<16x1xf32> -> vector<16x1xf32>
    %13 = vector.broadcast %12 : vector<16x1xf32> to vector<16x32xf32>
    %14 = arith.mulf %6, %13 : vector<16x32xf32>
    %cst_4 = arith.constant dense<0xFF800000> : vector<16xf32>
    %15 = vector.multi_reduction <maximumf>, %1, %cst_4 [1] : vector<16x32xf32> to vector<16xf32>
    %16 = vector.shape_cast %15 : vector<16xf32> to vector<16x1xf32>
    %17 = vector.broadcast %16 : vector<16x1xf32> to vector<16x32xf32>
    %18 = arith.subf %1, %17 : vector<16x32xf32>
    %19 = math.exp %18 : vector<16x32xf32>
    %cst_5 = arith.constant dense<0.000000e+00> : vector<16xf32>
    %20 = vector.multi_reduction <add>, %19, %cst_5 [1] : vector<16x32xf32> to vector<16xf32>
    %21 = vector.shape_cast %20 : vector<16xf32> to vector<16x1xf32>
    %22 = tpu.reciprocal %21 : vector<16x1xf32> -> vector<16x1xf32>
    %23 = vector.broadcast %22 : vector<16x1xf32> to vector<16x32xf32>
    %24 = arith.mulf %19, %23 : vector<16x32xf32>
    %cst_6 = arith.constant 0.000000e+00 : f32
    %25 = vector.broadcast %cst_6 : f32 to vector<16x32xf32>
    %26 = arith.mulf %14, %25 : vector<16x32xf32>
    %27 = arith.subf %24, %26 : vector<16x32xf32>
    %28 = arith.mulf %11, %27 : vector<16x32xf32>
    %cst_7 = arith.constant 0.000000e+00 : f32
    %29 = vector.broadcast %cst_7 : f32 to vector<16x32xf32>
    %30 = arith.subf %29, %28 : vector<16x32xf32>
    %31 = vector.shape_cast %30 : vector<16x32xf32> to vector<1x16x32xf32>
    %cst_8 = arith.constant dense<0.000000e+00> : vector<1xf32>
    %32 = vector.multi_reduction <add>, %31, %cst_8 [1, 2] : vector<1x16x32xf32> to vector<1xf32>
    %33 = vector.shape_cast %32 : vector<1xf32> to vector<1x1x1xf32>
    %34 = vector.extract %33[0, 0, 0] : f32 from vector<1x1x1xf32>
    %cst_9 = arith.constant 0.000000e+00 : f32
    %35 = vector.broadcast %cst_9 : f32 to vector<1x8x128xf32>
    %36 = vector.broadcast %34 : f32 to vector<1x8x128xf32>
    %37 = arith.addf %35, %36 : vector<1x8x128xf32>
    %c0_10 = arith.constant 0 : index
    %c0_11 = arith.constant 0 : index
    %c0_12 = arith.constant 0 : index
    %38 = vector.load %arg3[%c0_10, %c0_11, %c0_12] : memref<1x8x128xf32, #tpu.memory_space<vmem>>, vector<1x8x128xf32>
    tpu.vector_store %arg3[%c0_10, %c0_11, %c0_12], %37 {strides = array<i32>} : memref<1x8x128xf32, #tpu.memory_space<vmem>>, vector<1x8x128xf32>,
    return
  }
  func.func @transform_0(%arg0: i32) -> (i32, i32) {
    %c0_i32 = arith.constant 0 : i32
    %c0_i32_0 = arith.constant 0 : i32
    return %arg0, %c0_i32 : i32, i32
  }
  func.func @transform_1(%arg0: i32) -> (i32, i32) {
    %c0_i32 = arith.constant 0 : i32
    %c0_i32_0 = arith.constant 0 : i32
    return %arg0, %c0_i32 : i32, i32
  }
  func.func @transform_2(%arg0: i32) -> (i32, i32, i32) {
    %c0_i32 = arith.constant 0 : i32
    %c0_i32_0 = arith.constant 0 : i32
    %c0_i32_1 = arith.constant 0 : i32
    return %arg0, %c0_i32, %c0_i32_0 : i32, i32, i32
  }
}

</mosaic_0001>

<bundles_post_ra>
// kernel: tpu_custom_call.1
= control target key start
LH: loop header
LB: loop body
LE: loop exit
PB: predicated region body
PF: predicated region fallthrough
CT: control target
= control target key end

     0   :  { %7 = vsyncpa [#allocation3], 0  ;;  %s299_s0 = inlined_call_operand.hbm [shape: f32[16,32], index: 0, kind: input, shape index: {}]   ;;  %s300_s1 = inlined_call_operand.hbm [shape: f32[16,32], index: 1, kind: input, shape index: {}]   ;;  %s301_s2 = inlined_call_operand.hbm [shape: f32[1,8,128], index: 2, kind: output, shape index: {}]  }
   0x1   :  { %8 = vsyncpa [#allocation6], 0 }
   0x2   :  { %9 = vsyncpa [#allocation4], 0  ;;  %s233_s9 = smov [#allocation2]   ;;  %s161_s13 = scalar_lea.hbm %s299_s0, 256 }
   0x3   :  { %s15_s10 = sshll.u32 %s233_s9, 4  ;;  %p162_p0 = scmp.ne.s32.totalorder %s299_s0, %s161_s13  ;;  %s16_s10 = int_to_ptr.vmem [resolvable:$true] %s15_s10 }
   0x4   :  { %p165_p1 = scmp.lt.u32.totalorder %s161_s13, %s299_s0 }
   0x6   :  { %p167_p2 = pnand %p165_p1, %p162_p0 }
   0x8   :  { %170 = shalt.err (!%p167_p2)
}
   0x9   :  { %s171_s18 = scalar_lea.vmem %s16_s10, 256  ;;  %p176_p4 = scmp.lt.s32.totalorder %s16_s10, %s16_s10 }
   0xa   :  { %p172_p3 = scmp.ne.s32.totalorder %s16_s10, %s171_s18  ;;  %p177_p5 = scmp.lt.s32.totalorder %s171_s18, %s171_s18 }
   0xc   :  { %p178_p6 = por %p177_p5, %p176_p4 }
   0xe   :  { %p179_p7 = pnand %p178_p6, %p172_p3 }
  0x10   :  { %182 = shalt.err (!%p179_p7)
}
  0x11   :  { %s234_s19 = smov 128   ;;  %s235_s20 = smov 8  }
  0x12   :  { %21 = dma.hbm_to_vmem [thread:$0]  %s299_s0, 256, %s16_s10, [#allocation3], %s234_s19, %s234_s19, %s235_s20  }
  0x13   :  { %s236_s23 = smov [#allocation5]   ;;  %s183_s27 = scalar_lea.hbm %s300_s1, 256 }
  0x14   :  { %s27_s24 = sshll.u32 %s236_s23, 4  ;;  %p184_p8 = scmp.ne.s32.totalorder %s300_s1, %s183_s27  ;;  %s28_s24 = int_to_ptr.vmem [resolvable:$true] %s27_s24 }
  0x15   :  { %p187_p9 = scmp.lt.u32.totalorder %s183_s27, %s300_s1 }
  0x17   :  { %p189_p10 = pnand %p187_p9, %p184_p8 }
  0x19   :  { %192 = shalt.err (!%p189_p10)
}
  0x1a   :  { %s193_s4 = scalar_lea.vmem %s28_s24, 256  ;;  %p198_p12 = scmp.lt.s32.totalorder %s28_s24, %s28_s24 }
  0x1b   :  { %p194_p11 = scmp.ne.s32.totalorder %s28_s24, %s193_s4  ;;  %p199_p13 = scmp.lt.s32.totalorder %s193_s4, %s193_s4 }
  0x1d   :  { %p200_p0 = por %p199_p13, %p198_p12 }
  0x1f   :  { %p201_p1 = pnand %p200_p0, %p194_p11 }
  0x21   :  { %204 = shalt.err (!%p201_p1)
}
  0x22   :  { %33 = dma.hbm_to_vmem [thread:$0]  %s300_s1, 256, %s28_s24, [#allocation6], %s234_s19, %s234_s19, %s235_s20  }
  0x23   :  { %227 = dma.done.wait [#allocation3], 256  }
  0x24   :  { %228 = vsyncadd [#allocation3], 4294967040 }
  0x25   :  { %229 = dma.done.wait [#allocation6], 256  }
  0x26   :  { %230 = vsyncadd [#allocation6], 4294967040  ;;  %vm44_vm0 = vcmask 261120   ;;  %v40_v0 = vld [vmem:[#allocation2] sm:$0xff]  ;;  %v42_v1 = vld [vmem:[#allocation5] sm:$0xff]  ;;  %s237_s1 = smov [#allocation7]  }
  0x27   :  { %v41_v2 = vld [vmem:[#allocation2 + $0x8] sm:$0xff]  ;;  %v45_v3 = vsel %vm44_vm0, %v40_v0, -inf  ;;  %v73_v4 = vsel %vm44_vm0, %v42_v1, -inf  ;;  %v43_v5 = vld [vmem:[#allocation5 + $0x8] sm:$0xff]  ;;  %s124_s6 = sshll.u32 %s237_s1, 4  ;;  %s125_s6 = int_to_ptr.vmem [resolvable:$true] %s124_s6 }
  0x28   :  { %46 = vmax.xlane.f32.xlu0 %v45_v3  ;;  %74 = vmax.xlane.f32.xlu1 %v73_v4  ;;  %v48_v6 = vsel %vm44_vm0, %v41_v2, -inf  ;;  %v76_v7 = vsel %vm44_vm0, %v43_v5, -inf  ;;  %s205_s8 = scalar_lea.vmem %s125_s6, 128  ;;  %p210_p3 = scmp.lt.s32.totalorder %s125_s6, %s125_s6 }
  0x29   :  { %p206_p2 = scmp.ne.s32.totalorder %s125_s6, %s205_s8  ;;  %p211_p4 = scmp.lt.s32.totalorder %s205_s8, %s205_s8 }
  0x2b   :  { %p212_p5 = por %p211_p4, %p210_p3 }
  0x2c   :  { %49 = vmax.xlane.f32.xlu0 %v48_v6  ;;  %77 = vmax.xlane.f32.xlu1 %v76_v7 }
  0x2d   :  { %p213_p6 = pnand %p212_p5, %p206_p2 }
  0xb5   :  { %v47_v8 = vpop.xlane.xlu0 %46  ;;  %v75_v9 = vpop.xlane.xlu1 %74 }
  0xb6   :  { %v51_v10 = vsub.f32 %v40_v0, %v47_v8  ;;  %v79_v11 = vsub.f32 %v42_v1, %v75_v9 }
  0xb8   :  { %v53_v12 = vmul.f32 1.442695, %v51_v10  ;;  %v81_v13 = vmul.f32 1.442695, %v79_v11 }
  0xb9   :  { %v50_v14 = vpop.xlane.xlu0 %49  ;;  %v78_v15 = vpop.xlane.xlu1 %77 }
  0xba   :  { %141 = vpow2.f32 %v53_v12  ;;  %v52_v16 = vsub.f32 %v41_v2, %v50_v14  ;;  %v80_v17 = vsub.f32 %v43_v5, %v78_v15 }
  0xbb   :  { %143 = vpow2.f32 %v81_v13 }
  0xbc   :  { %v55_v18 = vmul.f32 1.442695, %v52_v16  ;;  %v83_v19 = vmul.f32 1.442695, %v80_v17 }
  0xbe   :  { %145 = vpow2.f32 %v55_v18 }
  0xbf   :  { %147 = vpow2.f32 %v83_v19 }
  0xc4   :  { %v142_v20 = vpop.eup %141 }
  0xc5   :  { %v144_v21 = vpop.eup %143  ;;  %v57_v22 = vsel %vm44_vm0, %v142_v20, 0.0 }
  0xc6   :  { %58 = vadd.xlane.f32.xlu0 %v57_v22  ;;  %v85_v23 = vsel %vm44_vm0, %v144_v21, 0.0 }
  0xc8   :  { %v146_v24 = vpop.eup %145 }
  0xc9   :  { %v148_v25 = vpop.eup %147  ;;  %v60_v26 = vsel %vm44_vm0, %v146_v24, 0.0 }
  0xca   :  { %86 = vadd.xlane.f32.xlu0 %v85_v23  ;;  %61 = vadd.xlane.f32.xlu1 %v60_v26  ;;  %v88_v27 = vsel %vm44_vm0, %v148_v25, 0.0 }
  0xce   :  { %89 = vadd.xlane.f32.xlu1 %v88_v27 }
 0x153   :  { %v59_v28 = vpop.xlane.xlu0 %58 }
 0x154   :  { %149 = vrcp.f32 %v59_v28 }
 0x155   :  { %151 = vlog2.f32 %v59_v28 }
 0x157   :  { %v62_v29 = vpop.xlane.xlu1 %61  ;;  %v87_v30 = vpop.xlane.xlu0 %86 }
 0x158   :  { %153 = vlog2.f32 %v62_v29 }
 0x159   :  { %155 = vrcp.f32 %v62_v29 }
 0x15a   :  { %157 = vrcp.f32 %v87_v30 }
 0x15b   :  { %v90_v31 = vpop.xlane.xlu1 %89 }
 0x15c   :  { %159 = vrcp.f32 %v90_v31 }
 0x15e   :  { %v150_v32 = vpop.eup %149 }
 0x15f   :  { %v152_v33 = vpop.eup %151  ;;  %v71_v34 = vmul.f32 %v150_v32, %v142_v20 }
 0x160   :  { %v64_v37 = vmul.f32 0.6931472, %v152_v33 }
 0x161   :  { %v95_v42 = vmul.f32 0.0, %v71_v34 }
 0x162   :  { %v154_v35 = vpop.eup %153  ;;  %v67_v44 = vsub.f32 %v51_v10, %v64_v37 }
 0x163   :  { %v156_v36 = vpop.eup %155  ;;  %v66_v40 = vmul.f32 0.6931472, %v154_v35 }
 0x164   :  { %v158_v38 = vpop.eup %157  ;;  %v72_v39 = vmul.f32 %v156_v36, %v146_v24 }
 0x165   :  { %v93_v41 = vmul.f32 %v158_v38, %v144_v21  ;;  %v68_v48 = vsub.f32 %v52_v16, %v66_v40 }
 0x166   :  { %v160_v43 = vpop.eup %159  ;;  %v96_v46 = vmul.f32 0.0, %v72_v39 }
 0x167   :  { %v94_v45 = vmul.f32 %v160_v43, %v148_v25  ;;  %v97_v47 = vsub.f32 %v93_v41, %v95_v42 }
 0x169   :  { %v98_v49 = vsub.f32 %v94_v45, %v96_v46  ;;  %v99_v50 = vmul.f32 %v97_v47, %v67_v44 }
 0x16b   :  { %v100_v51 = vmul.f32 %v98_v49, %v68_v48  ;;  %v101_v52 = vsub.f32 0.0, %v99_v50 }
 0x16d   :  { %v102_v53 = vsub.f32 0.0, %v100_v51  ;;  %v103_v54 = vsel %vm44_vm0, %v101_v52, 0.0 }
 0x16f   :  { %v104_v55 = vsel %vm44_vm0, %v102_v53, 0.0 }
 0x170   :  { %v105_v56 = vadd.f32 %v104_v55, %v103_v54 }
 0x172   :  { %106 = vadd.xlane.f32.xlu0 %v105_v56 }
 0x1ff   :  { %v107_v57 = vpop.xlane.xlu0 %106 }
 0x200   :  { %v108_v58 = vrot.slane %v107_v57, 4 }
 0x202   :  { %v109_v59 = vadd.f32 %v108_v58, %v107_v57 }
 0x204   :  { %v110_v60 = vrot.slane %v109_v59, 2 }
 0x206   :  { %v111_v61 = vadd.f32 %v110_v60, %v109_v59 }
 0x208   :  { %v112_v62 = vrot.slane %v111_v61, 1 }
 0x20a   :  { %v113_v63 = vadd.f32 %v112_v62, %v111_v61 }
 0x20c   :  { %134 = vpush %v113_v63 }
 0x23d   :  { %s135_s7 = spop %134 }
 0x23e   :  { %v115_v0 = vstv %s135_s7 }
 0x23f   :  { %117 = vst [vmem:[#allocation7] sm:$0xff] %v115_v0 }
 0x240   :  { %216 = shalt.err (!%p213_p6)
}
 0x241   :  { %s217_s11 = scalar_lea.hbm %s301_s2, 128 }
 0x242   :  { %p218_p7 = scmp.ne.s32.totalorder %s301_s2, %s217_s11  ;;  %p221_p8 = scmp.lt.u32.totalorder %s217_s11, %s301_s2 }
 0x244   :  { %p223_p9 = pnand %p221_p8, %p218_p7 }
 0x246   :  { %226 = shalt.err (!%p223_p9)
}
 0x247   :  { %127 = dma.vmem_to_hbm [thread:$0]  %s125_s6, 128, %s301_s2, [#allocation4]  }
 0x248   :  { %231 = dma.done.wait [#allocation4], 128  }
 0x249   :  { %232 = vsyncadd [#allocation4], 4294967168 }
 0x24a   :  { %131 = vsyncpa [#allocation3], 1 }
 0x24b   :  { %132 = vsyncpa [#allocation6], 1 }
 0x24c   :  { %133 = vsyncpa [#allocation4], 1 }

</bundles_post_ra>
